<compile_context>
chip_gen: v7x
topology: tpu7x:2x2x1
jax: 0.10.0
libtpu: 0.0.40
codegen_flags: <defaults>
</compile_context>

<pallas_src>
import functools

import jax
import jax.numpy as jnp
from jax.experimental import pallas as pl
from jax.experimental.pallas import tpu as pltpu


def _arm_kernel(x_ref, w_ref, b_ref, o_ref, *, inv_hw):
    # x_ref: (C, HW)  -- one batch item, HW on the lane axis
    # w_ref: (Cout, Cin) 1x1-conv weight, b_ref: (Cout, 1) bias
    x = x_ref[...]

    # AdaptiveAvgPool2d((1,1)): per-channel spatial mean  -> (Cin, 1)
    mean = jnp.sum(x, axis=-1, keepdims=True) * inv_hw

    # Conv2d(kernel_size=1): att[co] = sum_ci w[co,ci] * mean[ci] + b[co]  -> (Cout, 1)
    att = jnp.dot(w_ref[...], mean, preferred_element_type=jnp.float32) + b_ref[...]

    # Sigmoid
    att = 1.0 / (1.0 + jnp.exp(-att))

    # Broadcast multiply over the spatial axis (requires Cout == Cin, as in the module's usage)
    o_ref[...] = x * att


def attention_refinement_forward(x_nchw, weight, bias):
    """x_nchw: (N, Cin, H, W); weight: (Cout, Cin, 1, 1); bias: (Cout,)."""
    N, C, H, W = x_nchw.shape
    Cout, Cin, KH, KW = weight.shape
    assert (KH, KW) == (1, 1)
    assert Cin == C, "in_channels and out_channels should all be {}".format(C)
    assert Cout == C, "broadcast multiply in torch.mul requires out_channels == in_channels"
    HW = H * W

    # Layout plumbing only: flatten spatial dims so HW sits on the lane axis.
    x_flat = x_nchw.reshape(N, C, HW).astype(jnp.float32)
    w2 = weight.reshape(Cout, Cin).astype(jnp.float32)
    b2 = bias.reshape(Cout, 1).astype(jnp.float32)

    kernel = functools.partial(_arm_kernel, inv_hw=1.0 / HW)
    out = pl.pallas_call(
        kernel,
        out_shape=jax.ShapeDtypeStruct((N, C, HW), jnp.float32),
        grid_spec=pltpu.PrefetchScalarGridSpec(
            num_scalar_prefetch=0,
            grid=(N,),
            in_specs=[
                pl.BlockSpec((None, C, HW), lambda n: (n, 0, 0)),   # one batch item per step
                pl.BlockSpec((Cout, Cin), lambda n: (0, 0)),        # weight, resident
                pl.BlockSpec((Cout, 1), lambda n: (0, 0)),          # bias, resident
            ],
            out_specs=pl.BlockSpec((None, C, HW), lambda n: (n, 0, 0)),
        ),
        compiler_params=pltpu.CompilerParams(dimension_semantics=("parallel",)),
    )(x_flat, w2, b2)

    return out.reshape(N, C, H, W)


def _reference(x, weight, bias):
    N, C, H, W = x.shape
    Cout = weight.shape[0]
    mean = jnp.mean(x, axis=(2, 3), keepdims=True)                         # (N, C, 1, 1)
    att = jnp.einsum("oc,ncij->noij", weight.reshape(Cout, C), mean)
    att = att + bias.reshape(1, Cout, 1, 1)
    att = 1.0 / (1.0 + jnp.exp(-att))
    return x * att


if __name__ == "__main__":
    # AttentionRefinementModule(in_channels=4, out_channels=4)
    N, C, H, W = 2, 4, 16, 16

    key = jax.random.PRNGKey(0)
    kx, kw, kb = jax.random.split(key, 3)
    x = jax.random.normal(kx, (N, C, H, W), dtype=jnp.float32)
    weight = jax.random.normal(kw, (C, C, 1, 1), dtype=jnp.float32) * 0.1
    bias = jax.random.normal(kb, (C,), dtype=jnp.float32) * 0.1

    out = attention_refinement_forward(x, weight, bias)
    jax.block_until_ready(out)
    assert out.shape == (N, C, H, W), out.shape

    ref = _reference(x, weight, bias)
    assert jnp.allclose(out, ref, atol=1e-4, rtol=1e-4), float(jnp.max(jnp.abs(out - ref)))

    print("KERNEL_OK")
</pallas_src>

<mosaic_0001>
module attributes {stable_mosaic.version = 11 : i64} {
  func.func @_arm_kernel(%arg0: i32, %arg1: memref<1x4x256xf32, #tpu.memory_space<vmem>>, %arg2: memref<4x4xf32, #tpu.memory_space<vmem>>, %arg3: memref<4x1xf32, #tpu.memory_space<vmem>>, %arg4: memref<1x4x256xf32, #tpu.memory_space<vmem>>) attributes {dimension_semantics = [#tpu.dimension_semantics<parallel>], iteration_bounds = array<i64: 2>, scalar_prefetch = 0 : i64, scratch_operands = 0 : i64, tpu.core_type = #tpu.core_type<tc>, window_params = [{transform_indices = @transform_0, window_bounds = array<i64: 1, 4, 256>}, {pipeline_mode = #tpu.pipeline_mode<synchronous>, transform_indices = @transform_1, window_bounds = array<i64: 4, 4>}, {pipeline_mode = #tpu.pipeline_mode<synchronous>, transform_indices = @transform_2, window_bounds = array<i64: 4, 1>}, {transform_indices = @transform_3, window_bounds = array<i64: 1, 4, 256>}]} {
    %c0 = arith.constant 0 : index
    %c0_0 = arith.constant 0 : index
    %c0_1 = arith.constant 0 : index
    %0 = vector.load %arg1[%c0, %c0_0, %c0_1] : memref<1x4x256xf32, #tpu.memory_space<vmem>>, vector<1x4x256xf32>
    %1 = vector.shape_cast %0 : vector<1x4x256xf32> to vector<4x256xf32>
    %cst = arith.constant dense<0.000000e+00> : vector<4xf32>
    %2 = vector.multi_reduction <add>, %1, %cst [1] : vector<4x256xf32> to vector<4xf32>
    %3 = vector.shape_cast %2 : vector<4xf32> to vector<4x1xf32>
    %cst_2 = arith.constant 3.906250e-03 : f32
    %4 = vector.broadcast %cst_2 : f32 to vector<4x1xf32>
    %5 = arith.mulf %3, %4 : vector<4x1xf32>
    %c0_3 = arith.constant 0 : index
    %c0_4 = arith.constant 0 : index
    %6 = vector.load %arg2[%c0_3, %c0_4] : memref<4x4xf32, #tpu.memory_space<vmem>>, vector<4x4xf32>
    %cst_5 = arith.constant dense<0.000000e+00> : vector<4x1xf32>
    %7 = tpu.matmul %6, %5, %cst_5 {dimension_numbers = #tpu.dot_dimension_numbers<[1], [0], [0], [1], [0, 0, 1, 1], [], []>} : vector<4x4xf32>, vector<4x1xf32>, vector<4x1xf32> -> vector<4x1xf32>
    %c0_6 = arith.constant 0 : index
    %c0_7 = arith.constant 0 : index
    %8 = vector.load %arg3[%c0_6, %c0_7] : memref<4x1xf32, #tpu.memory_space<vmem>>, vector<4x1xf32>
    %9 = arith.addf %7, %8 : vector<4x1xf32>
    %cst_8 = arith.constant 0.000000e+00 : f32
    %10 = vector.broadcast %cst_8 : f32 to vector<4x1xf32>
    %11 = arith.subf %10, %9 : vector<4x1xf32>
    %12 = math.exp %11 : vector<4x1xf32>
    %cst_9 = arith.constant 1.000000e+00 : f32
    %13 = vector.broadcast %cst_9 : f32 to vector<4x1xf32>
    %14 = arith.addf %13, %12 : vector<4x1xf32>
    %cst_10 = arith.constant 1.000000e+00 : f32
    %15 = vector.broadcast %cst_10 : f32 to vector<4x1xf32>
    %16 = arith.divf %15, %14 : vector<4x1xf32>
    %17 = vector.broadcast %16 : vector<4x1xf32> to vector<4x256xf32>
    %18 = arith.mulf %1, %17 : vector<4x256xf32>
    %c0_11 = arith.constant 0 : index
    %c0_12 = arith.constant 0 : index
    %c0_13 = arith.constant 0 : index
    %19 = vector.load %arg4[%c0_11, %c0_12, %c0_13] : memref<1x4x256xf32, #tpu.memory_space<vmem>>, vector<1x4x256xf32>
    %20 = vector.shape_cast %19 : vector<1x4x256xf32> to vector<4x256xf32>
    %21 = vector.shape_cast %18 : vector<4x256xf32> to vector<1x4x256xf32>
    tpu.vector_store %arg4[%c0_11, %c0_12, %c0_13], %21 {strides = array<i32>} : memref<1x4x256xf32, #tpu.memory_space<vmem>>, vector<1x4x256xf32>,
    return
  }
  func.func @transform_0(%arg0: i32) -> (i32, i32, i32) {
    %c0_i32 = arith.constant 0 : i32
    %c0_i32_0 = arith.constant 0 : i32
    %c0_i32_1 = arith.constant 0 : i32
    return %arg0, %c0_i32, %c0_i32_0 : i32, i32, i32
  }
  func.func @transform_1(%arg0: i32) -> (i32, i32) {
    %c0_i32 = arith.constant 0 : i32
    %c0_i32_0 = arith.constant 0 : i32
    %c0_i32_1 = arith.constant 0 : i32
    return %c0_i32, %c0_i32_0 : i32, i32
  }
  func.func @transform_2(%arg0: i32) -> (i32, i32) {
    %c0_i32 = arith.constant 0 : i32
    %c0_i32_0 = arith.constant 0 : i32
    %c0_i32_1 = arith.constant 0 : i32
    return %c0_i32, %c0_i32_0 : i32, i32
  }
  func.func @transform_3(%arg0: i32) -> (i32, i32, i32) {
    %c0_i32 = arith.constant 0 : i32
    %c0_i32_0 = arith.constant 0 : i32
    %c0_i32_1 = arith.constant 0 : i32
    return %arg0, %c0_i32, %c0_i32_0 : i32, i32, i32
  }
}

</mosaic_0001>

<bundles_post_ra>
// kernel: tpu_custom_call.1
= control target key start
LH: loop header
LB: loop body
LE: loop exit
PB: predicated region body
PF: predicated region fallthrough
CT: control target
= control target key end

     0   :  { %8 = vsyncpa [#allocation3], 0  ;;  %s758_s0 = inlined_call_operand.hbm [shape: f32[2,4,256], index: 0, kind: input, shape index: {}]   ;;  %s759_s1 = inlined_call_operand.vmem [shape: f32[4,4], index: 1, kind: input, shape index: {}]   ;;  %s760_s2 = inlined_call_operand.vmem [shape: f32[4,1], index: 2, kind: input, shape index: {}]   ;;  %s761_s3 = inlined_call_operand.hbm [shape: f32[2,4,256], index: 3, kind: output, shape index: {}]  }
   0x1   :  { %10 = vsyncpa [#allocation3 + $0x1], 0 }
   0x2   :  { %11 = vsyncpa [#allocation4], 0 }
   0x3   :  { %13 = vsyncpa [#allocation4 + $0x1], 0  ;;  %s587_s12 = smov 0   ;;  %s589_s13 = smov 0  }
   0x4   :  { %s591_s14 = smov 0   ;;  %s593_s15 = smov 0  }
   0x5 LB: > { %s608_s16 = sadd.s32 4294967295, %s559_s15   ;;  %s382_s17 = sadd.s32 4294967294, %s559_s15   ;;  %s559_s15 = sphi %s593_s15, %s776_s15   ;;  %s555_s14 = sphi %s591_s14, %s775_s14   ;;  %s551_s13 = sphi %s589_s13, %s774_s13   ;;  %s547_s12 = sphi %s587_s12, %s773_s12  }
   0x6   : > { %s612_s18 = sadd.s32 1, %s559_s15   ;;  %s26_s19 = sadd.s32 1, %s555_s14 }
   0x7   : > { %s23_s20 = ssub.s32 %s559_s15, %s612_s18  ;;  %p33_p0 = scmp.ne.s32.totalorder %s555_s14, %s551_s13 }
   0x8   : > { %p24_p1 = scmp.eq.s32.totalorder %s23_s20, 0  ;;  %p34_p2 = scmp.eq.s32.totalorder %s559_s15, 0 }
   0x9   : > { %p39_p3 = scmp.ne.s32.totalorder %s551_s13, %s547_s12  ;;  %p40_p4 = scmp.eq.s32.totalorder %s608_s16, 0 }
   0xa   : > { %s624_s21 = scalar_select %p24_p1, %s555_s14, %s26_s19  }
   0xb   : > { %p626_p5 = por %p34_p2, %p33_p0  ;;  %p630_p6 = por %p40_p4, %p39_p3 }
   0xc   : > { %p105_p7 = scmp.eq.s32.totalorder %s608_s16, 1  ;;  %p111_p8 = scmp.eq.s32.totalorder %s382_s17, 1 }
   0xd   : > { %p419_p10 = scmp.lt.s32.totalorder %s559_s15, 2  ;;  %s137_s26 = sand.u32 1, %s555_s14  }
   0xe   : > { %p637_p11 = por %p105_p7, %p33_p0  ;;  %p641_p12 = por %p111_p8, %p39_p3 }
   0xf   : > { %s398_s27 = sshll.u32 %s559_s15, 7  ;;  %s385_s28 = sshll.u32 %s137_s26, 3 }
  0x10   : > { %s765_s24 = scalar_select %p637_p11, 1, 0 }
  0x11   : > { %s766_s25 = scalar_select %p641_p12, 1, 0 }
  0x12   : > { %s650_s4 = scalar_lea.hbm %s758_s0, %s398_s27  ;;  %s141_s5 = scalar_lea.vmem [#allocation2], %s385_s28 }
  0x13   : > { %s149_s6 = sshll.u32 %s141_s5, 4  ;;  %p654_p13 = pnand %p419_p10, %p626_p5  ;;  %s658_s6 = int_to_ptr.vmem [resolvable:$true] %s149_s6 }
  0x14   : > { %s138_s8 = scalar_lea.sflag [#allocation3], %s137_s26  ;;  %s463_s9 = scalar_lea.hbm %s650_s4, 128 }
  0x15   : > { %p464_p2 = scmp.ne.s32.totalorder %s650_s4, %s463_s9  ;;  %p465_p3 = pneg %p654_p13 }
  0x16   : > { %s468_s17 = scalar_lea.hbm %s758_s0, 256  ;;  %p469_p5 = scmp.lt.u32.totalorder %s650_s4, %s758_s0 }
  0x17   : > { %p466_p4 = pnand %p465_p3, %p464_p2  ;;  %p470_p8 = scmp.lt.u32.totalorder %s468_s17, %s463_s9 }
  0x18   : > { %p472_p9 = scmp.lt.u32.totalorder %s463_s9, %s650_s4 }
  0x19   : > { %p467_p7 = pneg %p466_p4  ;;  %p471_p10 = por %p470_p8, %p469_p5 }
  0x1b   : > { %p473_p0 = por %p472_p9, %p471_p10 }
  0x1d   : > { %p474_p1 = pnand %p473_p0, %p467_p7 }
  0x1f   : > { %477 = shalt.err (!%p474_p1)
}
  0x20   : > { %s478_s22 = scalar_lea.vmem %s658_s6, 128  ;;  %s561_s26 = smov [#allocation2]  }
  0x21   : > { %p479_p2 = scmp.ne.s32.totalorder %s658_s6, %s478_s22  ;;  %s483_s27 = sshll.u32 %s561_s26, 4  ;;  %s484_s27 = int_to_ptr.vmem [resolvable:$false] %s483_s27 }
  0x22   : > { %s485_s28 = scalar_lea.vmem %s484_s27, 256  ;;  %p486_p11 = scmp.lt.s32.totalorder %s658_s6, %s484_s27 }
  0x23   : > { %p481_p4 = pnand %p479_p2, %p465_p3  ;;  %p487_p5 = scmp.lt.s32.totalorder %s485_s28, %s478_s22 }
  0x25   : > { %p482_p12 = pneg %p481_p4  ;;  %p488_p8 = por %p487_p5, %p486_p11 }
  0x27   : > { %p489_p9 = pnand %p488_p8, %p482_p12 }
  0x29   : > { %492 = shalt.err (!%p489_p9)
}
  0x2a   : > { %414 = dma.hbm_to_vmem [thread:$0]  (!%p654_p13), %s650_s4, 128, %s658_s6, %s138_s8  }
  0x2b   : > { %p768_p0 = scmp.lt.s32.totalorder %s559_s15, 3  ;;  %p769_p1 = scmp.ge.s32.totalorder %s559_s15, 1 }
  0x2d   : > { %p155_p3 = pnand %p769_p1, %p768_p0 }
  0x2e   : > { %s692_s29 = sand.u32 (!%p155_p3), 1, %s551_s13  }
  0x2f   : > { %158 = sbr.rel (%p155_p3) target bundleno = 594 (0x252), region = 32  ;;  %s389_s30 = sshll.u32 (!%p155_p3), %s692_s29, 3 }
  0x30   : > { %s161_s5 = scalar_lea.sflag (!%p155_p3), [#allocation3], %s692_s29  ;;  %s164_s7 = scalar_lea.vmem (!%p155_p3), [#allocation2], %s389_s30 }
  0x36   : > { %538 = dma.done.wait (%p630_p6), %s161_s5, 128  }
  0x37   : > { %540 = vsyncadd (%p630_p6), %s161_s5, 4294967168  ;;  %vm191_vm0 = vcmask 1043456   ;;  %v187_v0 = vld [vmem:[%s164_s7] sm:$0xff]  ;;  %v562_v5 = vmov 0.0   ;;  %vm563_vm1 = vmmov 0   ;;  %vm200_vm2 = vcmask 31744  }
  0x38   : > { %v189_v1 = vcombine.high %v187_v0, %v187_v0  ;;  %v192_v2 = vsel %vm191_vm0, %v187_v0, 0.0  ;;  %402 = vmatprep.subr.mxu0 %v562_v5  ;;  %404 = vmatprep.mubr.msk.f32.mxu0 %vm563_vm1, %v562_v5  ;;  %v198_v8 = vld [vmem:[%s759_s1] sm:$0xf]  ;;  %v564_v9 = vmov 0   ;;  %v565_v19 = vmov 839922192  }
  0x39   : > { %457 = vset.pattern.permute.xlu0 %v564_v9  ;;  %v199_v10 = vld [vmem:[%s760_s2] sm:$0xf]  ;;  %v288_v20 = vunpack.c.l.s4 %v565_v19  ;;  %v290_v21 = vlaneseq  ;;  %s399_s9 = sshll.u32 %s608_s16, 7  ;;  %s186_s10 = scalar_lea.vmem [#allocation5], %s389_s30 }
  0x3a   : > { %v193_v3 = vsel %vm191_vm0, %v189_v1, 0.0  ;;  %s312_s11 = sshll.u32 %s186_s10, 4  ;;  %s714_s20 = scalar_lea.hbm %s761_s3, %s399_s9  ;;  %s716_s11 = int_to_ptr.vmem [resolvable:$true] %s312_s11 }
  0x3b   : > { %v194_v4 = vadd.f32 %v193_v3, %v192_v2  ;;  %v289_v22 = vunpack.c.0.s8 %v288_v20  ;;  %v291_v23 = vshrl.u32 %v290_v21, 7  ;;  %s298_s22 = scalar_lea.sflag [#allocation4], %s692_s29  ;;  %s493_s26 = scalar_lea.vmem %s716_s11, 128 }
  0x3c   : > { %p494_p6 = scmp.ne.s32.totalorder %s716_s11, %s493_s26  ;;  %p770_p11 = scmp.ne.s32.totalorder %s765_s24, 0 }
  0x3d   : > { %195 = vadd.xlane.f32.xlu0 %v194_v4  ;;  %v292_v24 = vsub.s32 %v289_v22, %v291_v23  ;;  %s566_s16 = smov [#allocation5]  }
  0x3e   : > { %p495_p12 = pnand %p494_p6, %p770_p11  ;;  %s497_s27 = sshll.u32 %s566_s16, 4  ;;  %s498_s27 = int_to_ptr.vmem [resolvable:$false] %s497_s27 }
  0x3f   : > { %s499_s28 = scalar_lea.vmem %s498_s27, 256  ;;  %p500_p7 = scmp.lt.s32.totalorder %s716_s11, %s498_s27 }
  0x40   : > { %p496_p13 = pneg %p495_p12  ;;  %p501_p10 = scmp.lt.s32.totalorder %s499_s28, %s493_s26 }
  0x42   : > { %p502_p2 = por %p501_p10, %p500_p7 }
  0x44   : > { %p503_p4 = pnand %p502_p2, %p496_p13 }
  0xca   : > { %v196_v6 = vpop.xlane.xlu0 %195 }
  0xcb   : > { %v197_v7 = vmul.f32 0.00390625, %v196_v6 }
  0xcd   : > { %403 = vmatpush3.msk.msra.mxu0 %vm191_vm0, %v197_v7 }
  0xce   : > { %405 = vmatmul.mubr.msk.f32.vlgmr.msra.gmra.mrb[0].mxu0 %vm200_vm2, %v198_v8 }
 0x1a1   : > { %v273_v11 = vpop.f32.mrb[0].mxu0 }
 0x1a2   : > { %v274_v12 = vadd.f32 %v273_v11, %v199_v10  ;;  %v406_v13 = vpop.f32.mrb[1].mxu0 }
 0x1a4   : > { %v277_v14 = vsub.f32 0.0, %v274_v12 }
 0x1a6   : > { %v278_v15 = vmul.f32 1.442695, %v277_v14 }
 0x1a8   : > { %459 = vpow2.f32 %v278_v15 }
 0x1b2   : > { %v460_v16 = vpop.eup %459 }
 0x1b3   : > { %v280_v17 = vadd.f32 1.0, %v460_v16 }
 0x1b5   : > { %461 = vrcp.f32 %v280_v17 }
 0x1bf   : > { %v462_v18 = vpop.eup %461 }
 0x1c0   : > { %285 = vperm.xlu0 %457, %v462_v18  }
 0x23f   : > { %v286_v25 = vpop.permute.xlu0 %285 }
 0x240   : > { %v293_v26 = vrot.slane %v286_v25, %v292_v24 }
 0x242   : > { %v295_v27 = vmul.f32 %v293_v26, %v187_v0 }
 0x244   : > { %296 = vst [vmem:[%s186_s10] sm:$0xff] %v295_v27 }
 0x245   : > { %506 = shalt.err (!%p503_p4)
}
 0x246   : > { %s507_s29 = scalar_lea.hbm %s714_s20, 128  ;;  %s511_s7 = scalar_lea.hbm %s761_s3, 256 }
 0x247   : > { %p508_p5 = scmp.ne.s32.totalorder %s714_s20, %s507_s29  ;;  %p512_p0 = scmp.lt.u32.totalorder %s714_s20, %s761_s3 }
 0x248   : > { %p513_p1 = scmp.lt.u32.totalorder %s511_s7, %s507_s29  ;;  %p515_p6 = scmp.lt.u32.totalorder %s507_s29, %s714_s20 }
 0x249   : > { %p509_p8 = pnand %p508_p5, %p770_p11 }
 0x24a   : > { %p514_p3 = por %p513_p1, %p512_p0 }
 0x24b   : > { %p510_p9 = pneg %p509_p8 }
 0x24c   : > { %p516_p12 = por %p515_p6, %p514_p3 }
 0x24e   : > { %p517_p13 = pnand %p516_p12, %p510_p9 }
 0x250   : > { %520 = shalt.err (!%p517_p13)
}
 0x251   : > { %409 = dma.vmem_to_hbm [thread:$0]  (%p770_p11), %s716_s11, 128, %s714_s20, %s298_s22  }
 0x252 PF: > { %s324_s23 = sand.u32 1, %s547_s12   ;;  %p771_p7 = scmp.ne.s32.totalorder %s766_s25, 0 }
 0x253   : > { %p772_p10 = scmp.ge.s32.totalorder %s559_s15, 2  ;;  %s325_s8 = scalar_lea.sflag [#allocation4], %s324_s23 }
 0x255   : > { %p416_p2 = pnand %p772_p10, %p771_p7 }
 0x257   : > { %542 = dma.done.wait (!%p416_p2), %s325_s8, 128  }
 0x258   : > { %544 = vsyncadd (!%p416_p2), %s325_s8, 4294967168  ;;  %p16_p4 = scmp.ge.s32.totalorder %s612_s18, 4   ;;  %s773_s12 = smov %s551_s13 }
 0x259   : > { %s774_s13 = smov %s555_s14  ;;  %s775_s14 = smov %s624_s21 }
 0x25a   : > { %s776_s15 = smov %s612_s18  ;;  %18 = sbr.rel (!%p16_p4) target bundleno = 5 (0x5), region = 77 }
 0x261   :  { %330 = vsyncpa [#allocation3], 1 }
 0x262   :  { %332 = vsyncpa [#allocation3 + $0x1], 1 }
 0x263   :  { %333 = vsyncpa [#allocation4], 1 }
 0x264   :  { %335 = vsyncpa [#allocation4 + $0x1], 1 }

</bundles_post_ra>
